<compile_context>
chip_gen: v7x
topology: tpu7x:2x2x1
jax: 0.10.0
libtpu: 0.0.40
codegen_flags: <defaults>
</compile_context>

<pallas_src>
import jax
import jax.numpy as jnp
from jax.experimental import pallas as pl
from jax.experimental.pallas import tpu as pltpu

IN_FEATURES = 3
OUT_FEATURES = 4
MAX_BATCH_TILE = 8192  # lanes (batch columns) per grid step; multiple of 128


def linear_tanh_kernel(w_ref, b_ref, x_ref, o_ref):
    # w_ref: (12,) f32 SMEM — PyTorch (out, in) weight, row-major flattened
    # b_ref: (4,)  f32 SMEM
    # x_ref: (3, T) f32 VMEM — batch on lanes
    # o_ref: (4, T) f32 VMEM
    x0 = x_ref[0:1, :]  # (1, T)
    x1 = x_ref[1:2, :]
    x2 = x_ref[2:3, :]
    rows = []
    for n in range(OUT_FEATURES):
        # Pure scalar-splat VPU FMAs: o[n, :] = w[n,0]*x0 + w[n,1]*x1 + w[n,2]*x2 + b[n]
        y = (w_ref[IN_FEATURES * n + 0] * x0
             + w_ref[IN_FEATURES * n + 1] * x1
             + w_ref[IN_FEATURES * n + 2] * x2
             + b_ref[n])
        rows.append(y)
    # One dense (4, T) block: single EUP tanh + single unmasked lane-dense store.
    o_ref[...] = jnp.tanh(jnp.concatenate(rows, axis=0)).astype(o_ref.dtype)


def model_forward(x, weight, bias):
    """x: (B, 3) f32; weight: (4, 3) f32 (PyTorch layout); bias: (4,) f32 -> (B, 4) f32."""
    B = x.shape[0]

    # Lane-dense layout plumbing: batch on the last (lane) axis, padded to a
    # multiple of 128 (and of the tile). Weight/bias flattened for SMEM.
    b_pad = -(-B // 128) * 128
    tile = min(b_pad, MAX_BATCH_TILE)
    b_pad = -(-b_pad // tile) * tile

    xT = jnp.transpose(x)                              # (3, B)
    if b_pad != B:
        xT = jnp.pad(xT, ((0, 0), (0, b_pad - B)))     # padded cols compute tanh(bias), sliced off
    w_flat = weight.reshape(-1)                        # (12,) row-major: w_flat[n*3+k] = weight[n,k]

    grid = (b_pad // tile,)

    cost = pl.CostEstimate(
        flops=2 * b_pad * IN_FEATURES * OUT_FEATURES + b_pad * OUT_FEATURES,
        transcendentals=b_pad * OUT_FEATURES,
        bytes_accessed=4 * (IN_FEATURES * b_pad            # x (lane-padded)
                            + IN_FEATURES * OUT_FEATURES   # weight (SMEM)
                            + OUT_FEATURES                  # bias (SMEM)
                            + OUT_FEATURES * b_pad),        # output
    )

    out = pl.pallas_call(
        linear_tanh_kernel,
        out_shape=jax.ShapeDtypeStruct((OUT_FEATURES, b_pad), x.dtype),
        grid_spec=pltpu.PrefetchScalarGridSpec(
            num_scalar_prefetch=2,  # weight + bias land in SMEM before the grid runs
            grid=grid,
            in_specs=[
                # batch-lane tile marches with the grid; feature dim (3) is full
                pl.BlockSpec((IN_FEATURES, tile), lambda i, w, b: (0, i)),
            ],
            out_specs=pl.BlockSpec((OUT_FEATURES, tile), lambda i, w, b: (0, i)),
        ),
        compiler_params=pltpu.CompilerParams(
            dimension_semantics=("parallel",),  # v7x: shard batch tiles over 2 TCs when grid > 1
        ),
        cost_estimate=cost,
    )(w_flat, bias, xT)

    # Back to PyTorch's (batch, out_features) convention.
    return jnp.transpose(out[:, :B])


if __name__ == "__main__":
    key = jax.random.PRNGKey(0)
    kx, kw, kb = jax.random.split(key, 3)

    batch = 8
    x = jax.random.normal(kx, (batch, IN_FEATURES), dtype=jnp.float32)

    # Deterministic init matching nn.Linear's U(-1/sqrt(in), 1/sqrt(in)) convention.
    bound = 1.0 / (IN_FEATURES ** 0.5)
    weight = jax.random.uniform(
        kw, (OUT_FEATURES, IN_FEATURES), dtype=jnp.float32, minval=-bound, maxval=bound
    )
    bias = jax.random.uniform(
        kb, (OUT_FEATURES,), dtype=jnp.float32, minval=-bound, maxval=bound
    )

    out = model_forward(x, weight, bias)
    jax.block_until_ready(out)

    # Reference check in plain JAX.
    ref = jnp.tanh(x @ weight.T + bias)
    assert out.shape == (batch, OUT_FEATURES)
    assert jnp.allclose(out, ref, atol=1e-5, rtol=1e-5)

    print("KERNEL_OK")
</pallas_src>

<mosaic_0001>
module attributes {stable_mosaic.version = 11 : i64} {
  func.func @linear_tanh_kernel(%arg0: i32, %arg1: memref<12xf32, #tpu.memory_space<smem>>, %arg2: memref<4xf32, #tpu.memory_space<smem>>, %arg3: memref<3x128xf32, #tpu.memory_space<vmem>>, %arg4: memref<4x128xf32, #tpu.memory_space<vmem>>) attributes {dimension_semantics = [#tpu.dimension_semantics<parallel>], iteration_bounds = array<i64: 1>, scalar_prefetch = 2 : i64, scratch_operands = 0 : i64, tpu.core_type = #tpu.core_type<tc>, window_params = [{transform_indices = @transform_0, window_bounds = array<i64: 3, 128>}, {transform_indices = @transform_1, window_bounds = array<i64: 4, 128>}]} {
    %c0 = arith.constant 0 : index
    %c0_0 = arith.constant 0 : index
    %0 = vector.load %arg3[%c0, %c0_0] : memref<3x128xf32, #tpu.memory_space<vmem>>, vector<1x128xf32>
    %c1 = arith.constant 1 : index
    %c0_1 = arith.constant 0 : index
    %1 = vector.load %arg3[%c1, %c0_1] : memref<3x128xf32, #tpu.memory_space<vmem>>, vector<1x128xf32>
    %c2 = arith.constant 2 : index
    %c0_2 = arith.constant 0 : index
    %2 = vector.load %arg3[%c2, %c0_2] : memref<3x128xf32, #tpu.memory_space<vmem>>, vector<1x128xf32>
    %c0_3 = arith.constant 0 : index
    %3 = memref.load %arg1[%c0_3] : memref<12xf32, #tpu.memory_space<smem>>
    %4 = vector.broadcast %3 : f32 to vector<1x128xf32>
    %5 = arith.mulf %4, %0 : vector<1x128xf32>
    %c1_4 = arith.constant 1 : index
    %6 = memref.load %arg1[%c1_4] : memref<12xf32, #tpu.memory_space<smem>>
    %7 = vector.broadcast %6 : f32 to vector<1x128xf32>
    %8 = arith.mulf %7, %1 : vector<1x128xf32>
    %9 = arith.addf %5, %8 : vector<1x128xf32>
    %c2_5 = arith.constant 2 : index
    %10 = memref.load %arg1[%c2_5] : memref<12xf32, #tpu.memory_space<smem>>
    %11 = vector.broadcast %10 : f32 to vector<1x128xf32>
    %12 = arith.mulf %11, %2 : vector<1x128xf32>
    %13 = arith.addf %9, %12 : vector<1x128xf32>
    %c0_6 = arith.constant 0 : index
    %14 = memref.load %arg2[%c0_6] : memref<4xf32, #tpu.memory_space<smem>>
    %15 = vector.broadcast %14 : f32 to vector<1x128xf32>
    %16 = arith.addf %13, %15 : vector<1x128xf32>
    %c3 = arith.constant 3 : index
    %17 = memref.load %arg1[%c3] : memref<12xf32, #tpu.memory_space<smem>>
    %18 = vector.broadcast %17 : f32 to vector<1x128xf32>
    %19 = arith.mulf %18, %0 : vector<1x128xf32>
    %c4 = arith.constant 4 : index
    %20 = memref.load %arg1[%c4] : memref<12xf32, #tpu.memory_space<smem>>
    %21 = vector.broadcast %20 : f32 to vector<1x128xf32>
    %22 = arith.mulf %21, %1 : vector<1x128xf32>
    %23 = arith.addf %19, %22 : vector<1x128xf32>
    %c5 = arith.constant 5 : index
    %24 = memref.load %arg1[%c5] : memref<12xf32, #tpu.memory_space<smem>>
    %25 = vector.broadcast %24 : f32 to vector<1x128xf32>
    %26 = arith.mulf %25, %2 : vector<1x128xf32>
    %27 = arith.addf %23, %26 : vector<1x128xf32>
    %c1_7 = arith.constant 1 : index
    %28 = memref.load %arg2[%c1_7] : memref<4xf32, #tpu.memory_space<smem>>
    %29 = vector.broadcast %28 : f32 to vector<1x128xf32>
    %30 = arith.addf %27, %29 : vector<1x128xf32>
    %c6 = arith.constant 6 : index
    %31 = memref.load %arg1[%c6] : memref<12xf32, #tpu.memory_space<smem>>
    %32 = vector.broadcast %31 : f32 to vector<1x128xf32>
    %33 = arith.mulf %32, %0 : vector<1x128xf32>
    %c7 = arith.constant 7 : index
    %34 = memref.load %arg1[%c7] : memref<12xf32, #tpu.memory_space<smem>>
    %35 = vector.broadcast %34 : f32 to vector<1x128xf32>
    %36 = arith.mulf %35, %1 : vector<1x128xf32>
    %37 = arith.addf %33, %36 : vector<1x128xf32>
    %c8 = arith.constant 8 : index
    %38 = memref.load %arg1[%c8] : memref<12xf32, #tpu.memory_space<smem>>
    %39 = vector.broadcast %38 : f32 to vector<1x128xf32>
    %40 = arith.mulf %39, %2 : vector<1x128xf32>
    %41 = arith.addf %37, %40 : vector<1x128xf32>
    %c2_8 = arith.constant 2 : index
    %42 = memref.load %arg2[%c2_8] : memref<4xf32, #tpu.memory_space<smem>>
    %43 = vector.broadcast %42 : f32 to vector<1x128xf32>
    %44 = arith.addf %41, %43 : vector<1x128xf32>
    %c9 = arith.constant 9 : index
    %45 = memref.load %arg1[%c9] : memref<12xf32, #tpu.memory_space<smem>>
    %46 = vector.broadcast %45 : f32 to vector<1x128xf32>
    %47 = arith.mulf %46, %0 : vector<1x128xf32>
    %c10 = arith.constant 10 : index
    %48 = memref.load %arg1[%c10] : memref<12xf32, #tpu.memory_space<smem>>
    %49 = vector.broadcast %48 : f32 to vector<1x128xf32>
    %50 = arith.mulf %49, %1 : vector<1x128xf32>
    %51 = arith.addf %47, %50 : vector<1x128xf32>
    %c11 = arith.constant 11 : index
    %52 = memref.load %arg1[%c11] : memref<12xf32, #tpu.memory_space<smem>>
    %53 = vector.broadcast %52 : f32 to vector<1x128xf32>
    %54 = arith.mulf %53, %2 : vector<1x128xf32>
    %55 = arith.addf %51, %54 : vector<1x128xf32>
    %c3_9 = arith.constant 3 : index
    %56 = memref.load %arg2[%c3_9] : memref<4xf32, #tpu.memory_space<smem>>
    %57 = vector.broadcast %56 : f32 to vector<1x128xf32>
    %58 = arith.addf %55, %57 : vector<1x128xf32>
    %59 = tpu.concatenate %16, %30, %44, %58 in 0 : vector<1x128xf32>, vector<1x128xf32>, vector<1x128xf32>, vector<1x128xf32> -> vector<4x128xf32>
    %60 = math.tanh %59 : vector<4x128xf32>
    %c0_10 = arith.constant 0 : index
    %c0_11 = arith.constant 0 : index
    %61 = vector.load %arg4[%c0_10, %c0_11] : memref<4x128xf32, #tpu.memory_space<vmem>>, vector<4x128xf32>
    tpu.vector_store %arg4[%c0_10, %c0_11], %60 {strides = array<i32>} : memref<4x128xf32, #tpu.memory_space<vmem>>, vector<4x128xf32>,
    return
  }
  func.func @transform_0(%arg0: i32, %arg1: memref<12xf32, #tpu.memory_space<smem>>, %arg2: memref<4xf32, #tpu.memory_space<smem>>) -> (i32, i32) {
    %c0_i32 = arith.constant 0 : i32
    %c0_i32_0 = arith.constant 0 : i32
    return %c0_i32, %arg0 : i32, i32
  }
  func.func @transform_1(%arg0: i32, %arg1: memref<12xf32, #tpu.memory_space<smem>>, %arg2: memref<4xf32, #tpu.memory_space<smem>>) -> (i32, i32) {
    %c0_i32 = arith.constant 0 : i32
    %c0_i32_0 = arith.constant 0 : i32
    return %c0_i32, %arg0 : i32, i32
  }
}

</mosaic_0001>

<bundles_post_ra>
// kernel: tpu_custom_call.1
= control target key start
LH: loop header
LB: loop body
LE: loop exit
PB: predicated region body
PF: predicated region fallthrough
CT: control target
= control target key end

     0   :  { %s259_s0 = inlined_call_operand.hbm [shape: f32[12], index: 0, kind: input, shape index: {}]   ;;  %s260_s2 = inlined_call_operand.vmem [shape: f32[3,128], index: 2, kind: input, shape index: {}]   ;;  %s261_s3 = inlined_call_operand.hbm [shape: f32[4,128], index: 3, kind: output, shape index: {}]   ;;  %s262_s1 = inlined_call_operand.vmem [shape: f32[4], index: 1, kind: input, shape index: {}]  }
   0x1   :  { %s128_s14 = scalar_lea.hbm %s259_s0, 16 }
   0x2   :  { %p129_p0 = scmp.ne.s32.totalorder %s259_s0, %s128_s14  ;;  %p132_p1 = scmp.lt.u32.totalorder %s128_s14, %s259_s0 }
   0x4   :  { %p134_p2 = pnand %p132_p1, %p129_p0 }
   0x6   :  { %137 = shalt.err (!%p134_p2)  }
   0x7   :  { %s176_s19 = smov [#allocation3]   ;;  %s10_s24 = sshll.u32 %s262_s1, 4  ;;  %s11_s24 = int_to_ptr.vmem [resolvable:$true] %s10_s24 }
   0x8   :  { %9 = dma.hbm_to_smem %s259_s0, 16, %s176_s19, [#allocation2] }
   0x9   :  { %s138_s25 = scalar_lea.vmem %s11_s24, 16  ;;  %p143_p4 = scmp.lt.s32.totalorder %s11_s24, %s11_s24 }
   0xa   :  { %p139_p3 = scmp.ne.s32.totalorder %s11_s24, %s138_s25  ;;  %p144_p5 = scmp.lt.s32.totalorder %s138_s25, %s138_s25 }
   0xc   :  { %p145_p6 = por %p144_p5, %p143_p4 }
   0xe   :  { %p146_p7 = pnand %p145_p6, %p139_p3 }
  0x10   :  { %149 = shalt.err (!%p146_p7)  }
  0x11   :  { %s177_s26 = smov [#allocation4]  }
  0x12   :  { %13 = dma.vmem_to_smem %s11_s24, 16, %s177_s26, [#allocation2] }
  0x13   :  { %172 = dma.done.wait [#allocation2], 32 }
  0x14   :  { %173 = vsyncadd [#allocation2], 4294967264 }
  0x15   :  { %15 = sfence }
  0x16   :  { %s22_s27 = sld [smem:[#allocation3]]  ;;  %s109_s28 = sld [smem:[#allocation3 + $0x1]] }
  0x17   :  { %s110_s0 = sld [smem:[#allocation3 + $0x2]]  ;;  %s214_s29 = sld [smem:[#allocation4]] }
  0x18   :  { %s111_s30 = sld [smem:[#allocation3 + $0x3]]  ;;  %s112_s1 = sld [smem:[#allocation3 + $0x4]] }
  0x19   :  { %16 = vsyncpa [#allocation6], 0  ;;  %s113_s4 = sld [smem:[#allocation3 + $0x5]]  ;;  %s216_s5 = sld [smem:[#allocation4 + $0x1]]  ;;  %v19_v0 = vld [vmem:[%s260_s2] sm:$0x1] }
  0x1a   :  { %s115_s6 = sld [smem:[#allocation3 + $0x6]]  ;;  %s116_s7 = sld [smem:[#allocation3 + $0x7]]  ;;  %v20_v1 = vld [vmem:[%s260_s2 + $0x1] sm:$0x1]  ;;  %v21_v4 = vld [vmem:[%s260_s2 + $0x2] sm:$0x1] }
  0x1b   :  { %s221_s10 = sld [smem:[#allocation3 + $0x8]]  ;;  %s223_s11 = sld [smem:[#allocation4 + $0x2]]  ;;  %vm87_vm0 = vcmask 1040384   ;;  %vm89_vm1 = vcmask 1041408   ;;  %vm91_vm2 = vcmask 1042432  }
  0x1c   :  { %v23_v2 = vstv %s22_s27  ;;  %v26_v3 = vstv %s109_s28  ;;  %s228_s14 = sld [smem:[#allocation3 + $0x9]]  ;;  %s230_s15 = sld [smem:[#allocation3 + $0xa]] }
  0x1d   :  { %v24_v5 = vmul.f32 %v23_v2, %v19_v0  ;;  %v27_v6 = vmul.f32 %v26_v3, %v20_v1  ;;  %v30_v7 = vstv %s110_s0  ;;  %s235_s18 = sld [smem:[#allocation3 + $0xb]]  ;;  %v34_v15 = vstv %s214_s29  ;;  %s178_s2 = smov [#allocation5]  }
  0x1e   :  { %v31_v8 = vmul.f32 %v30_v7, %v21_v4  ;;  %v37_v9 = vstv %s111_s30  ;;  %v40_v10 = vstv %s112_s1  ;;  %s237_s19 = sld [smem:[#allocation4 + $0x3]]  ;;  %s101_s20 = sshll.u32 %s178_s2, 4  ;;  %s102_s20 = int_to_ptr.vmem [resolvable:$true] %s101_s20 }
  0x1f   :  { %v28_v11 = vadd.f32 %v27_v6, %v24_v5  ;;  %v38_v12 = vmul.f32 %v37_v9, %v19_v0  ;;  %v41_v13 = vmul.f32 %v40_v10, %v20_v1  ;;  %v44_v14 = vstv %s113_s4  ;;  %s150_s21 = scalar_lea.vmem %s102_s20, 64  ;;  %p155_p9 = scmp.lt.s32.totalorder %s102_s20, %s102_s20 }
  0x20   :  { %v45_v16 = vmul.f32 %v44_v14, %v21_v4  ;;  %v51_v17 = vstv %s115_s6  ;;  %v54_v18 = vstv %s116_s7  ;;  %v48_v23 = vstv %s216_s5  ;;  %p151_p8 = scmp.ne.s32.totalorder %s102_s20, %s150_s21  ;;  %p156_p10 = scmp.lt.s32.totalorder %s150_s21, %s150_s21 }
  0x21   :  { %v32_v19 = vadd.f32 %v31_v8, %v28_v11  ;;  %v42_v20 = vadd.f32 %v41_v13, %v38_v12  ;;  %v52_v21 = vmul.f32 %v51_v17, %v19_v0  ;;  %v55_v22 = vmul.f32 %v54_v18, %v20_v1 }
  0x22   :  { %v58_v24 = vstv %s221_s10  ;;  %v65_v25 = vstv %s228_s14  ;;  %v68_v26 = vstv %s230_s15  ;;  %v62_v30 = vstv %s223_s11  ;;  %p157_p11 = por %p156_p10, %p155_p9 }
  0x23   :  { %v46_v27 = vadd.f32 %v45_v16, %v42_v20  ;;  %v56_v28 = vadd.f32 %v55_v22, %v52_v21  ;;  %v59_v29 = vmul.f32 %v58_v24, %v21_v4  ;;  %v66_v31 = vmul.f32 %v65_v25, %v19_v0 }
  0x24   :  { %v69_v32 = vmul.f32 %v68_v26, %v20_v1  ;;  %v72_v33 = vstv %s235_s18  ;;  %v35_v34 = vadd.f32 %v34_v15, %v32_v19  ;;  %v76_v40 = vstv %s237_s19  ;;  %p158_p12 = pnand %p157_p11, %p151_p8 }
  0x25   :  { %v49_v35 = vadd.f32 %v48_v23, %v46_v27  ;;  %v60_v36 = vadd.f32 %v59_v29, %v56_v28  ;;  %v73_v37 = vmul.f32 %v72_v33, %v21_v4 }
  0x26   :  { %v70_v38 = vadd.f32 %v69_v32, %v66_v31 }
  0x27   :  { %v63_v39 = vadd.f32 %v62_v30, %v60_v36  ;;  %v79_v41 = vrot.slane %v49_v35, 7 }
  0x28   :  { %v74_v42 = vadd.f32 %v73_v37, %v70_v38 }
  0x29   :  { %v82_v43 = vrot.slane %v63_v39, 6  ;;  %v88_v44 = vsel %vm87_vm0, %v35_v34, %v79_v41 }
  0x2a   :  { %v77_v45 = vadd.f32 %v76_v40, %v74_v42 }
  0x2b   :  { %v90_v46 = vsel %vm89_vm1, %v88_v44, %v82_v43 }
  0x2c   :  { %v85_v47 = vrot.slane %v77_v45, 5 }
  0x2e   :  { %v92_v48 = vsel %vm91_vm2, %v90_v46, %v85_v47 }
  0x2f   :  { %126 = vtanh.f32 %v92_v48 }
  0x39   :  { %v127_v49 = vpop.eup %126 }
  0x3a   :  { %94 = vst [vmem:[#allocation5] sm:$0xf] %v127_v49 }
  0x3b   :  { %161 = shalt.err (!%p158_p12)
}
  0x3c   :  { %s162_s24 = scalar_lea.hbm %s261_s3, 64 }
  0x3d   :  { %p163_p13 = scmp.ne.s32.totalorder %s261_s3, %s162_s24  ;;  %p166_p0 = scmp.lt.u32.totalorder %s162_s24, %s261_s3 }
  0x3f   :  { %p168_p1 = pnand %p166_p0, %p163_p13 }
  0x41   :  { %171 = shalt.err (!%p168_p1)
}
  0x42   :  { %104 = dma.vmem_to_hbm [thread:$0]  %s102_s20, 64, %s261_s3, [#allocation6]  }
  0x43   :  { %174 = dma.done.wait [#allocation6], 64  }
  0x44   :  { %175 = vsyncadd [#allocation6], 4294967232 }
  0x45   :  { %108 = vsyncpa [#allocation6], 1 }

</bundles_post_ra>
